<compile_context>
chip_gen: v7x
topology: tpu7x:2x2x1
jax: 0.10.0
libtpu: 0.0.40
codegen_flags: <defaults>
</compile_context>

<pallas_src>
import jax
import jax.numpy as jnp
from jax.experimental import pallas as pl
from jax.experimental.pallas import tpu as pltpu


def _round_up(x, m):
    return ((x + m - 1) // m) * m


# --------------------------------------------------------------------------- kernel
def fcn_kernel(x_ref, w1_ref, b1_ref, w2_ref, b2_ref, w3_ref, b3_ref, o_ref):
    """One batch tile of: relu(x@W1+b1) -> [dropout=id] -> relu(.@W2+b2) -> .@W3+b3."""
    cdt = w1_ref.dtype  # compute dtype (bf16 or f32); accumulation is always f32.

    # Cast in-kernel so x stays un-copied / un-padded in HBM.
    x = x_ref[...].astype(cdt)

    h = jnp.dot(x, w1_ref[...], preferred_element_type=jnp.float32)
    h = jnp.maximum(h + b1_ref[...], 0.0)

    # Dropout(p=0.2) is identity in eval mode.
    # TODO(synk): training-mode dropout (pltpu.prng_seed + prng_random_bits mask).

    h = jnp.dot(h.astype(cdt), w2_ref[...], preferred_element_type=jnp.float32)
    h = jnp.maximum(h + b2_ref[...], 0.0)

    out = jnp.dot(h.astype(cdt), w3_ref[...], preferred_element_type=jnp.float32)
    o_ref[...] = (out + b3_ref[...]).astype(o_ref.dtype)


# ------------------------------------------------------------------- param handling
def prepare_params(params, *, compute_dtype=jnp.bfloat16):
    """Pad + cast the weights ONCE at model-load time (hoisted out of fcn_forward).

    Weights are stored (in_features, out_features) so the kernel computes x @ W.
    Only the hidden feature dims are padded (to multiples of 128, MXU/lane aligned);
    n_input and n_output keep their true widths so x loads and the output writeback
    carry no padding bytes.  Padded columns/rows are zero => math is unchanged.
    """
    w1, b1 = params["w1"], params["b1"]
    w2, b2 = params["w2"], params["b2"]
    w3, b3 = params["w3"], params["b3"]

    n_input, h0 = w1.shape
    h1, n_output = w2.shape[1], w3.shape[1]
    h0_p, h1_p = _round_up(h0, 128), _round_up(h1, 128)

    def pad2(a, rows, cols, dtype):
        return jnp.pad(a, ((0, rows - a.shape[0]), (0, cols - a.shape[1]))).astype(dtype)

    return {
        "w1": pad2(w1, n_input, h0_p, compute_dtype),
        "b1": pad2(b1, 1, h0_p, jnp.float32),
        "w2": pad2(w2, h0_p, h1_p, compute_dtype),
        "b2": pad2(b2, 1, h1_p, jnp.float32),
        "w3": pad2(w3, h1_p, n_output, compute_dtype),
        "b3": pad2(b3, 1, n_output, jnp.float32),
    }


def _choose_batch_tile(B, block_b):
    """Batch tile: multiple of 8 sublanes, sized so the grid has >=2 steps whenever
    possible (keeps both v7x TensorCores busy under dimension_semantics='parallel')."""
    if B <= 8:
        return B  # single block equal to the full (tiny) batch dim
    n_steps = max(2, pl.cdiv(B, block_b))
    if n_steps % 2:
        n_steps += 1  # even step count balances the two cores
    return min(_round_up(pl.cdiv(B, n_steps), 8), _round_up(B, 8))


# ----------------------------------------------------------------------- entry point
def fcn_forward(x, prepared_params, *, block_b=512, out_dtype=jnp.float32):
    """Fused MLP forward.

    x: (B, n_input) or (n_input,) float array.
    prepared_params: output of prepare_params() (padded/cast once at load time).
    out_dtype: set to the compute dtype (e.g. bf16) when downstream allows to halve
               the output VMEM tile and HBM writeback.
    """
    p = prepared_params
    w1, b1, w2, b2, w3, b3 = p["w1"], p["b1"], p["w2"], p["b2"], p["w3"], p["b3"]

    squeeze = x.ndim == 1
    if squeeze:
        x = x[None, :]  # mirrors FCN._format's unsqueeze for a single state
    B, n_input = x.shape
    assert n_input == w1.shape[0], (n_input, w1.shape)
    h0_p, h1_p = w1.shape[1], w2.shape[1]
    n_output = w3.shape[1]

    tb = _choose_batch_tile(B, block_b)
    grid = (pl.cdiv(B, tb),)  # ragged last block: OOB reads unused, OOB writes masked

    # TODO(synk): when the resident weights outgrow VMEM (huge hidden dims, v7x's
    # 64 MiB), switch to a K/N-tiled grid with an "arbitrary" reduction axis and an
    # f32 VMEM accumulator instead of the all-resident strategy below.

    def build(single_buffered_weights):
        def resident(shape):
            kw = {}
            if single_buffered_weights:
                # Constant index_map -> one VMEM copy is enough; halves weight footprint.
                kw["pipeline_mode"] = pl.Buffered(1)
            return pl.BlockSpec(shape, lambda i: (0, 0), **kw)

        wb = 1 if single_buffered_weights else 2
        weight_bytes = sum(a.size * a.dtype.itemsize for a in (w1, w2, w3))
        bias_bytes = sum(a.size * a.dtype.itemsize for a in (b1, b2, b3))
        io_bytes = 2 * tb * (n_input * x.dtype.itemsize
                             + n_output * jnp.dtype(out_dtype).itemsize)
        scratch_bytes = 2 * tb * (h0_p + h1_p) * 4  # f32 intermediates (generous)
        need = wb * (weight_bytes + bias_bytes) + io_bytes + scratch_bytes
        vmem_limit = min(64 << 20, max(16 << 20, int(need * 1.25) + (2 << 20)))

        flops = 2 * B * (n_input * h0_p + h0_p * h1_p + h1_p * n_output)
        bytes_accessed = (B * n_input * x.dtype.itemsize
                          + weight_bytes + bias_bytes
                          + B * n_output * jnp.dtype(out_dtype).itemsize)

        return pl.pallas_call(
            fcn_kernel,
            out_shape=jax.ShapeDtypeStruct((B, n_output), out_dtype),
            grid_spec=pltpu.PrefetchScalarGridSpec(
                num_scalar_prefetch=0,
                grid=grid,
                in_specs=[
                    pl.BlockSpec((tb, n_input), lambda i: (i, 0)),  # x: batch-tiled
                    resident((n_input, h0_p)),    # w1 (VMEM-resident)
                    resident((1, h0_p)),          # b1
                    resident((h0_p, h1_p)),       # w2
                    resident((1, h1_p)),          # b2
                    resident((h1_p, n_output)),   # w3
                    resident((1, n_output)),      # b3
                ],
                out_specs=pl.BlockSpec((tb, n_output), lambda i: (i, 0)),
            ),
            compiler_params=pltpu.CompilerParams(
                dimension_semantics=("parallel",),  # shard batch tiles across TCs
                vmem_limit_bytes=vmem_limit,
            ),
            cost_estimate=pl.CostEstimate(
                flops=flops, transcendentals=0, bytes_accessed=bytes_accessed),
        )

    try:
        out = build(True)(x, w1, b1, w2, b2, w3, b3)
    except Exception:
        # pl.Buffered(1) not supported by this jax build -> default double buffering.
        out = build(False)(x, w1, b1, w2, b2, w3, b3)

    return out[0] if squeeze else out


# ------------------------------------------------------------------- reference & init
def init_params(key, n_input, n_hidden, n_output):
    """PyTorch nn.Linear-style init (uniform +/- 1/sqrt(fan_in)); weights stored (in, out)."""
    keys = jax.random.split(key, 6)

    def linear(kw, kb, fan_in, fan_out):
        bound = 1.0 / jnp.sqrt(float(fan_in))
        w = jax.random.uniform(kw, (fan_in, fan_out), jnp.float32, -bound, bound)
        b = jax.random.uniform(kb, (1, fan_out), jnp.float32, -bound, bound)
        return w, b

    w1, b1 = linear(keys[0], keys[1], n_input, n_hidden[0])
    w2, b2 = linear(keys[2], keys[3], n_hidden[0], n_hidden[1])
    w3, b3 = linear(keys[4], keys[5], n_hidden[1], n_output)
    return {"w1": w1, "b1": b1, "w2": w2, "b2": b2, "w3": w3, "b3": b3}


def fcn_reference(x, params):
    """Pure-JAX f32 reference for correctness checks."""
    h = jnp.maximum(x @ params["w1"] + params["b1"], 0.0)
    h = jnp.maximum(h @ params["w2"] + params["b2"], 0.0)
    return h @ params["w3"] + params["b3"]


if __name__ == "__main__":
    key = jax.random.PRNGKey(0)
    k_x, k_p = jax.random.split(key)

    # Small shapes consistent with the module defaults; B=16 gives a 2-step batch grid.
    B, n_input, n_hidden, n_output = 16, 16, (32, 32), 4

    x = jax.random.normal(k_x, (B, n_input), dtype=jnp.float32)
    params = init_params(k_p, n_input, n_hidden, n_output)
    ref = fcn_reference(x, params)

    # f32 compute path: tight check (padding only adds zero rows/columns).
    p_f32 = prepare_params(params, compute_dtype=jnp.float32)
    out_f32 = jax.block_until_ready(fcn_forward(x, p_f32))
    assert out_f32.shape == (B, n_output), out_f32.shape
    assert jnp.allclose(out_f32, ref, atol=1e-5, rtol=1e-5), "f32 mismatch vs reference"

    # bf16 compute (default) with bf16 output writeback: loose tolerance.
    p_bf16 = prepare_params(params, compute_dtype=jnp.bfloat16)
    out_bf16 = jax.block_until_ready(fcn_forward(x, p_bf16, out_dtype=jnp.bfloat16))
    assert out_bf16.shape == (B, n_output), out_bf16.shape
    assert jnp.allclose(out_bf16.astype(jnp.float32), ref, atol=5e-2, rtol=5e-2), \
        "bf16 mismatch vs reference"

    # Single-state path (mirrors FCN._format's unsqueeze for one observation).
    out_1d = jax.block_until_ready(fcn_forward(x[0], p_f32))
    assert out_1d.shape == (n_output,), out_1d.shape
    assert jnp.allclose(out_1d, ref[0], atol=1e-5, rtol=1e-5), "1-D state mismatch"

    print("KERNEL_OK")
</pallas_src>

<mosaic_0001>
module attributes {stable_mosaic.version = 11 : i64} {
  func.func @fcn_kernel(%arg0: i32, %arg1: memref<8x16xf32, #tpu.memory_space<vmem>>, %arg2: memref<16x128xf32, #tpu.memory_space<vmem>>, %arg3: memref<1x128xf32, #tpu.memory_space<vmem>>, %arg4: memref<128x128xf32, #tpu.memory_space<vmem>>, %arg5: memref<1x128xf32, #tpu.memory_space<vmem>>, %arg6: memref<128x4xf32, #tpu.memory_space<vmem>>, %arg7: memref<1x4xf32, #tpu.memory_space<vmem>>, %arg8: memref<8x4xf32, #tpu.memory_space<vmem>>) attributes {dimension_semantics = [#tpu.dimension_semantics<parallel>], iteration_bounds = array<i64: 2>, scalar_prefetch = 0 : i64, scratch_operands = 0 : i64, tpu.core_type = #tpu.core_type<tc>, window_params = [{transform_indices = @transform_0, window_bounds = array<i64: 8, 16>}, {pipeline_mode = #tpu.pipeline_mode<synchronous>, transform_indices = @transform_1, window_bounds = array<i64: 16, 128>}, {pipeline_mode = #tpu.pipeline_mode<synchronous>, transform_indices = @transform_2, window_bounds = array<i64: 1, 128>}, {pipeline_mode = #tpu.pipeline_mode<synchronous>, transform_indices = @transform_3, window_bounds = array<i64: 128, 128>}, {pipeline_mode = #tpu.pipeline_mode<synchronous>, transform_indices = @transform_4, window_bounds = array<i64: 1, 128>}, {pipeline_mode = #tpu.pipeline_mode<synchronous>, transform_indices = @transform_5, window_bounds = array<i64: 128, 4>}, {pipeline_mode = #tpu.pipeline_mode<synchronous>, transform_indices = @transform_6, window_bounds = array<i64: 1, 4>}, {transform_indices = @transform_7, window_bounds = array<i64: 8, 4>}]} {
    %c0 = arith.constant 0 : index
    %c0_0 = arith.constant 0 : index
    %0 = vector.load %arg1[%c0, %c0_0] : memref<8x16xf32, #tpu.memory_space<vmem>>, vector<8x16xf32>
    %c0_1 = arith.constant 0 : index
    %c0_2 = arith.constant 0 : index
    %1 = vector.load %arg2[%c0_1, %c0_2] : memref<16x128xf32, #tpu.memory_space<vmem>>, vector<16x128xf32>
    %cst = arith.constant dense<0.000000e+00> : vector<8x128xf32>
    %2 = tpu.matmul %0, %1, %cst {dimension_numbers = #tpu.dot_dimension_numbers<[1], [0], [0], [1], [0, 0, 1, 1], [], []>} : vector<8x16xf32>, vector<16x128xf32>, vector<8x128xf32> -> vector<8x128xf32>
    %c0_3 = arith.constant 0 : index
    %c0_4 = arith.constant 0 : index
    %3 = vector.load %arg3[%c0_3, %c0_4] : memref<1x128xf32, #tpu.memory_space<vmem>>, vector<1x128xf32>
    %4 = vector.broadcast %3 : vector<1x128xf32> to vector<8x128xf32>
    %5 = arith.addf %2, %4 : vector<8x128xf32>
    %cst_5 = arith.constant 0.000000e+00 : f32
    %6 = vector.broadcast %cst_5 : f32 to vector<8x128xf32>
    %7 = arith.maximumf %5, %6 : vector<8x128xf32>
    %c0_6 = arith.constant 0 : index
    %c0_7 = arith.constant 0 : index
    %8 = vector.load %arg4[%c0_6, %c0_7] : memref<128x128xf32, #tpu.memory_space<vmem>>, vector<128x128xf32>
    %cst_8 = arith.constant dense<0.000000e+00> : vector<8x128xf32>
    %9 = tpu.matmul %7, %8, %cst_8 {dimension_numbers = #tpu.dot_dimension_numbers<[1], [0], [0], [1], [0, 0, 1, 1], [], []>} : vector<8x128xf32>, vector<128x128xf32>, vector<8x128xf32> -> vector<8x128xf32>
    %c0_9 = arith.constant 0 : index
    %c0_10 = arith.constant 0 : index
    %10 = vector.load %arg5[%c0_9, %c0_10] : memref<1x128xf32, #tpu.memory_space<vmem>>, vector<1x128xf32>
    %11 = vector.broadcast %10 : vector<1x128xf32> to vector<8x128xf32>
    %12 = arith.addf %9, %11 : vector<8x128xf32>
    %cst_11 = arith.constant 0.000000e+00 : f32
    %13 = vector.broadcast %cst_11 : f32 to vector<8x128xf32>
    %14 = arith.maximumf %12, %13 : vector<8x128xf32>
    %c0_12 = arith.constant 0 : index
    %c0_13 = arith.constant 0 : index
    %15 = vector.load %arg6[%c0_12, %c0_13] : memref<128x4xf32, #tpu.memory_space<vmem>>, vector<128x4xf32>
    %cst_14 = arith.constant dense<0.000000e+00> : vector<8x4xf32>
    %16 = tpu.matmul %14, %15, %cst_14 {dimension_numbers = #tpu.dot_dimension_numbers<[1], [0], [0], [1], [0, 0, 1, 1], [], []>} : vector<8x128xf32>, vector<128x4xf32>, vector<8x4xf32> -> vector<8x4xf32>
    %c0_15 = arith.constant 0 : index
    %c0_16 = arith.constant 0 : index
    %17 = vector.load %arg7[%c0_15, %c0_16] : memref<1x4xf32, #tpu.memory_space<vmem>>, vector<1x4xf32>
    %18 = vector.broadcast %17 : vector<1x4xf32> to vector<8x4xf32>
    %19 = arith.addf %16, %18 : vector<8x4xf32>
    %c0_17 = arith.constant 0 : index
    %c0_18 = arith.constant 0 : index
    %20 = vector.load %arg8[%c0_17, %c0_18] : memref<8x4xf32, #tpu.memory_space<vmem>>, vector<8x4xf32>
    tpu.vector_store %arg8[%c0_17, %c0_18], %19 {strides = array<i32>} : memref<8x4xf32, #tpu.memory_space<vmem>>, vector<8x4xf32>,
    return
  }
  func.func @transform_0(%arg0: i32) -> (i32, i32) {
    %c0_i32 = arith.constant 0 : i32
    %c0_i32_0 = arith.constant 0 : i32
    return %arg0, %c0_i32 : i32, i32
  }
  func.func @transform_1(%arg0: i32) -> (i32, i32) {
    %c0_i32 = arith.constant 0 : i32
    %c0_i32_0 = arith.constant 0 : i32
    %c0_i32_1 = arith.constant 0 : i32
    return %c0_i32, %c0_i32_0 : i32, i32
  }
  func.func @transform_2(%arg0: i32) -> (i32, i32) {
    %c0_i32 = arith.constant 0 : i32
    %c0_i32_0 = arith.constant 0 : i32
    %c0_i32_1 = arith.constant 0 : i32
    return %c0_i32, %c0_i32_0 : i32, i32
  }
  func.func @transform_3(%arg0: i32) -> (i32, i32) {
    %c0_i32 = arith.constant 0 : i32
    %c0_i32_0 = arith.constant 0 : i32
    %c0_i32_1 = arith.constant 0 : i32
    return %c0_i32, %c0_i32_0 : i32, i32
  }
  func.func @transform_4(%arg0: i32) -> (i32, i32) {
    %c0_i32 = arith.constant 0 : i32
    %c0_i32_0 = arith.constant 0 : i32
    %c0_i32_1 = arith.constant 0 : i32
    return %c0_i32, %c0_i32_0 : i32, i32
  }
  func.func @transform_5(%arg0: i32) -> (i32, i32) {
    %c0_i32 = arith.constant 0 : i32
    %c0_i32_0 = arith.constant 0 : i32
    %c0_i32_1 = arith.constant 0 : i32
    return %c0_i32, %c0_i32_0 : i32, i32
  }
  func.func @transform_6(%arg0: i32) -> (i32, i32) {
    %c0_i32 = arith.constant 0 : i32
    %c0_i32_0 = arith.constant 0 : i32
    %c0_i32_1 = arith.constant 0 : i32
    return %c0_i32, %c0_i32_0 : i32, i32
  }
  func.func @transform_7(%arg0: i32) -> (i32, i32) {
    %c0_i32 = arith.constant 0 : i32
    %c0_i32_0 = arith.constant 0 : i32
    return %arg0, %c0_i32 : i32, i32
  }
}

module attributes {stable_mosaic.version = 11 : i64} {
  func.func @fcn_kernel(%arg0: i32, %arg1: memref<8x16xf32, #tpu.memory_space<vmem>>, %arg2: memref<16x128xf32, #tpu.memory_space<vmem>>, %arg3: memref<1x128xf32, #tpu.memory_space<vmem>>, %arg4: memref<128x128xf32, #tpu.memory_space<vmem>>, %arg5: memref<1x128xf32, #tpu.memory_space<vmem>>, %arg6: memref<128x4xf32, #tpu.memory_space<vmem>>, %arg7: memref<1x4xf32, #tpu.memory_space<vmem>>, %arg8: memref<8x4xf32, #tpu.memory_space<vmem>>) attributes {dimension_semantics = [#tpu.dimension_semantics<parallel>], iteration_bounds = array<i64: 2>, scalar_prefetch = 0 : i64, scratch_operands = 0 : i64, tpu.core_type = #tpu.core_type<tc>, window_params = [{transform_indices = @transform_0, window_bounds = array<i64: 8, 16>}, {pipeline_mode = #tpu.pipeline_mode<synchronous>, transform_indices = @transform_1, window_bounds = array<i64: 16, 128>}, {pipeline_mode = #tpu.pipeline_mode<synchronous>, transform_indices = @transform_2, window_bounds = array<i64: 1, 128>}, {pipeline_mode = #tpu.pipeline_mode<synchronous>, transform_indices = @transform_3, window_bounds = array<i64: 128, 128>}, {pipeline_mode = #tpu.pipeline_mode<synchronous>, transform_indices = @transform_4, window_bounds = array<i64: 1, 128>}, {pipeline_mode = #tpu.pipeline_mode<synchronous>, transform_indices = @transform_5, window_bounds = array<i64: 128, 4>}, {pipeline_mode = #tpu.pipeline_mode<synchronous>, transform_indices = @transform_6, window_bounds = array<i64: 1, 4>}, {transform_indices = @transform_7, window_bounds = array<i64: 8, 4>}]} {
    %c0 = arith.constant 0 : index
    %c0_0 = arith.constant 0 : index
    %0 = vector.load %arg1[%c0, %c0_0] : memref<8x16xf32, #tpu.memory_space<vmem>>, vector<8x16xf32>
    %c0_1 = arith.constant 0 : index
    %c0_2 = arith.constant 0 : index
    %1 = vector.load %arg2[%c0_1, %c0_2] : memref<16x128xf32, #tpu.memory_space<vmem>>, vector<16x128xf32>
    %cst = arith.constant dense<0.000000e+00> : vector<8x128xf32>
    %2 = tpu.matmul %0, %1, %cst {dimension_numbers = #tpu.dot_dimension_numbers<[1], [0], [0], [1], [0, 0, 1, 1], [], []>} : vector<8x16xf32>, vector<16x128xf32>, vector<8x128xf32> -> vector<8x128xf32>
    %c0_3 = arith.constant 0 : index
    %c0_4 = arith.constant 0 : index
    %3 = vector.load %arg3[%c0_3, %c0_4] : memref<1x128xf32, #tpu.memory_space<vmem>>, vector<1x128xf32>
    %4 = vector.broadcast %3 : vector<1x128xf32> to vector<8x128xf32>
    %5 = arith.addf %2, %4 : vector<8x128xf32>
    %cst_5 = arith.constant 0.000000e+00 : f32
    %6 = vector.broadcast %cst_5 : f32 to vector<8x128xf32>
    %7 = arith.maximumf %5, %6 : vector<8x128xf32>
    %c0_6 = arith.constant 0 : index
    %c0_7 = arith.constant 0 : index
    %8 = vector.load %arg4[%c0_6, %c0_7] : memref<128x128xf32, #tpu.memory_space<vmem>>, vector<128x128xf32>
    %cst_8 = arith.constant dense<0.000000e+00> : vector<8x128xf32>
    %9 = tpu.matmul %7, %8, %cst_8 {dimension_numbers = #tpu.dot_dimension_numbers<[1], [0], [0], [1], [0, 0, 1, 1], [], []>} : vector<8x128xf32>, vector<128x128xf32>, vector<8x128xf32> -> vector<8x128xf32>
    %c0_9 = arith.constant 0 : index
    %c0_10 = arith.constant 0 : index
    %10 = vector.load %arg5[%c0_9, %c0_10] : memref<1x128xf32, #tpu.memory_space<vmem>>, vector<1x128xf32>
    %11 = vector.broadcast %10 : vector<1x128xf32> to vector<8x128xf32>
    %12 = arith.addf %9, %11 : vector<8x128xf32>
    %cst_11 = arith.constant 0.000000e+00 : f32
    %13 = vector.broadcast %cst_11 : f32 to vector<8x128xf32>
    %14 = arith.maximumf %12, %13 : vector<8x128xf32>
    %c0_12 = arith.constant 0 : index
    %c0_13 = arith.constant 0 : index
    %15 = vector.load %arg6[%c0_12, %c0_13] : memref<128x4xf32, #tpu.memory_space<vmem>>, vector<128x4xf32>
    %cst_14 = arith.constant dense<0.000000e+00> : vector<8x4xf32>
    %16 = tpu.matmul %14, %15, %cst_14 {dimension_numbers = #tpu.dot_dimension_numbers<[1], [0], [0], [1], [0, 0, 1, 1], [], []>} : vector<8x128xf32>, vector<128x4xf32>, vector<8x4xf32> -> vector<8x4xf32>
    %c0_15 = arith.constant 0 : index
    %c0_16 = arith.constant 0 : index
    %17 = vector.load %arg7[%c0_15, %c0_16] : memref<1x4xf32, #tpu.memory_space<vmem>>, vector<1x4xf32>
    %18 = vector.broadcast %17 : vector<1x4xf32> to vector<8x4xf32>
    %19 = arith.addf %16, %18 : vector<8x4xf32>
    %c0_17 = arith.constant 0 : index
    %c0_18 = arith.constant 0 : index
    %20 = vector.load %arg8[%c0_17, %c0_18] : memref<8x4xf32, #tpu.memory_space<vmem>>, vector<8x4xf32>
    tpu.vector_store %arg8[%c0_17, %c0_18], %19 {strides = array<i32>} : memref<8x4xf32, #tpu.memory_space<vmem>>, vector<8x4xf32>,
    return
  }
  func.func @transform_0(%arg0: i32) -> (i32, i32) {
    %c0_i32 = arith.constant 0 : i32
    %c0_i32_0 = arith.constant 0 : i32
    return %arg0, %c0_i32 : i32, i32
  }
  func.func @transform_1(%arg0: i32) -> (i32, i32) {
    %c0_i32 = arith.constant 0 : i32
    %c0_i32_0 = arith.constant 0 : i32
    %c0_i32_1 = arith.constant 0 : i32
    return %c0_i32, %c0_i32_0 : i32, i32
  }
  func.func @transform_2(%arg0: i32) -> (i32, i32) {
    %c0_i32 = arith.constant 0 : i32
    %c0_i32_0 = arith.constant 0 : i32
    %c0_i32_1 = arith.constant 0 : i32
    return %c0_i32, %c0_i32_0 : i32, i32
  }
  func.func @transform_3(%arg0: i32) -> (i32, i32) {
    %c0_i32 = arith.constant 0 : i32
    %c0_i32_0 = arith.constant 0 : i32
    %c0_i32_1 = arith.constant 0 : i32
    return %c0_i32, %c0_i32_0 : i32, i32
  }
  func.func @transform_4(%arg0: i32) -> (i32, i32) {
    %c0_i32 = arith.constant 0 : i32
    %c0_i32_0 = arith.constant 0 : i32
    %c0_i32_1 = arith.constant 0 : i32
    return %c0_i32, %c0_i32_0 : i32, i32
  }
  func.func @transform_5(%arg0: i32) -> (i32, i32) {
    %c0_i32 = arith.constant 0 : i32
    %c0_i32_0 = arith.constant 0 : i32
    %c0_i32_1 = arith.constant 0 : i32
    return %c0_i32, %c0_i32_0 : i32, i32
  }
  func.func @transform_6(%arg0: i32) -> (i32, i32) {
    %c0_i32 = arith.constant 0 : i32
    %c0_i32_0 = arith.constant 0 : i32
    %c0_i32_1 = arith.constant 0 : i32
    return %c0_i32, %c0_i32_0 : i32, i32
  }
  func.func @transform_7(%arg0: i32) -> (i32, i32) {
    %c0_i32 = arith.constant 0 : i32
    %c0_i32_0 = arith.constant 0 : i32
    return %arg0, %c0_i32 : i32, i32
  }
}

</mosaic_0001>

<bundles_post_ra>
// kernel: tpu_custom_call.1
= control target key start
LH: loop header
LB: loop body
LE: loop exit
PB: predicated region body
PF: predicated region fallthrough
CT: control target
= control target key end

     0   :  { %12 = vsyncpa [#allocation3], 0  ;;  %s1303_s0 = inlined_call_operand.hbm [shape: f32[16,16], index: 0, kind: input, shape index: {}]   ;;  %s1304_s1 = inlined_call_operand.hbm [shape: f32[16,128], index: 1, kind: input, shape index: {}]   ;;  %s1305_s2 = inlined_call_operand.vmem [shape: f32[1,128], index: 2, kind: input, shape index: {}]   ;;  %s1306_s3 = inlined_call_operand.vmem [shape: f32[128,128], index: 3, kind: input, shape index: {}]   ;;  %s1307_s4 = inlined_call_operand.vmem [shape: f32[1,128], index: 4, kind: input, shape index: {}]   ;;  %s1308_s5 = inlined_call_operand.vmem [shape: f32[128,4], index: 5, kind: input, shape index: {}]   ;;  %s1309_s6 = inlined_call_operand.vmem [shape: f32[1,4], index: 6, kind: input, shape index: {}]   ;;  %s1310_s7 = inlined_call_operand.vmem [shape: f32[16,4], index: 7, kind: output, shape index: {}]  }
   0x1   :  { %14 = vsyncpa [#allocation3 + $0x1], 0 }
   0x2   :  { %15 = vsyncpa [#allocation5], 0  ;;  %s1039_s24 = smov 0   ;;  %s1041_s25 = smov 0  }
   0x3   :  { %s1043_s26 = smov 0   ;;  %s1045_s27 = smov 0  }
   0x4 LB: > { %s1058_s28 = sadd.s32 4294967295, %s990_s27   ;;  %p41_p0 = scmp.ne.s32.totalorder %s982_s25, %s978_s24  ;;  %s990_s27 = sphi %s1045_s27, %s1325_s27   ;;  %s986_s26 = sphi %s1043_s26, %s1324_s26   ;;  %s982_s25 = sphi %s1041_s25, %s1323_s25   ;;  %s978_s24 = sphi %s1039_s24, %s1322_s24  }
   0x5   : > { %p1311_p1 = scmp.eq.s32.totalorder %s1058_s28, 0  ;;  %p659_p2 = scmp.ge.s32.totalorder %s990_s27, 1 }
   0x6   : > { %p204_p3 = scmp.lt.s32.totalorder %s990_s27, 3  ;;  %s992_s8 = smov [#allocation4]  }
   0x7   : > { %p1066_p4 = por %p1311_p1, %p41_p0  ;;  %s216_s9 = sshll.u32 %s992_s8, 4  ;;  %s217_s9 = int_to_ptr.vmem [resolvable:$true] %s216_s9 }
   0x8   : > { %p1070_p5 = pnand %p659_p2, %p204_p3  ;;  %s1083_s11 = sadd.s32 1, %s990_s27  }
   0x9   : > { %s1314_s29 = scalar_select %p1066_p4, 1, 0 }
   0xa   : > { %s1315_s30 = scalar_select %p1070_p5, 1, 0 }
   0xb   : > { %p845_p6 = pneg %p1070_p5  ;;  %s28_s12 = sadd.s32 1, %s986_s26 }
   0xc   : > { %s25_s13 = ssub.s32 %s990_s27, %s1083_s11  ;;  %s894_s16 = scalar_lea.hbm %s1304_s1, 256 }
   0xd   : > { %p1078_p7 = pnand %p845_p6, %p1311_p1  ;;  %p895_p8 = scmp.ne.s32.totalorder %s1304_s1, %s894_s16 }
   0xe   : > { %p901_p12 = scmp.lt.u32.totalorder %s894_s16, %s1304_s1 }
   0xf   : > { %p896_p9 = pneg %p1078_p7 }
  0x11   : > { %p897_p10 = pnand %p896_p9, %p895_p8 }
  0x13   : > { %p898_p11 = pneg %p897_p10 }
  0x15   : > { %p903_p13 = pnand %p901_p12, %p898_p11 }
  0x17   : > { %906 = shalt.err (!%p903_p13)
}
  0x18   : > { %s907_s21 = scalar_lea.vmem %s217_s9, 256  ;;  %p915_p6 = scmp.lt.s32.totalorder %s217_s9, %s217_s9 }
  0x19   : > { %p908_p0 = scmp.ne.s32.totalorder %s217_s9, %s907_s21  ;;  %p916_p1 = scmp.lt.s32.totalorder %s907_s21, %s907_s21 }
  0x1b   : > { %p910_p2 = pnand %p908_p0, %p896_p9  ;;  %p917_p4 = por %p916_p1, %p915_p6 }
  0x1d   : > { %p911_p3 = pneg %p910_p2 }
  0x1f   : > { %p918_p5 = pnand %p917_p4, %p911_p3 }
  0x21   : > { %921 = shalt.err (!%p918_p5)
}
  0x22   : > { %s993_s22 = smov 128   ;;  %s994_s23 = smov 8  }
  0x23   : > { %848 = dma.hbm_to_vmem [thread:$0]  (!%p1078_p7), %s1304_s1, 256, %s217_s9, [#allocation5], %s993_s22, %s993_s22, %s994_s23  }
  0x24   : > { %p26_p8 = scmp.eq.s32.totalorder %s25_s13, 0  ;;  %p35_p9 = scmp.ne.s32.totalorder %s986_s26, %s982_s25 }
  0x25   : > { %p36_p1 = scmp.eq.s32.totalorder %s990_s27, 0  ;;  %p854_p4 = scmp.lt.s32.totalorder %s990_s27, 2 }
  0x26   : > { %s1109_s14 = scalar_select %p26_p8, %s986_s26, %s28_s12  }
  0x27   : > { %p37_p5 = por %p36_p1, %p35_p9  ;;  %s245_s15 = sand.u32 1, %s986_s26  }
  0x28   : > { %s662_s16 = sshll.u32 %s245_s15, 3  ;;  %s663_s17 = sshll.u32 %s990_s27, 7 }
  0x29   : > { %s1116_s20 = scalar_lea.hbm %s1303_s0, %s663_s17  ;;  %s249_s9 = scalar_lea.vmem [#allocation2], %s662_s16 }
  0x2a   : > { %s256_s10 = sshll.u32 %s249_s9, 4  ;;  %p1120_p7 = pnand %p854_p4, %p37_p5  ;;  %s1118_s10 = int_to_ptr.vmem [resolvable:$true] %s256_s10 }
  0x2b   : > { %s246_s27 = scalar_lea.sflag [#allocation3], %s245_s15  ;;  %s922_s13 = scalar_lea.hbm %s1116_s20, 128 }
  0x2c   : > { %p923_p10 = scmp.ne.s32.totalorder %s1116_s20, %s922_s13  ;;  %p924_p11 = pneg %p1120_p7 }
  0x2d   : > { %s927_s23 = scalar_lea.hbm %s1303_s0, 256  ;;  %p928_p0 = scmp.lt.u32.totalorder %s1116_s20, %s1303_s0 }
  0x2e   : > { %p925_p12 = pnand %p924_p11, %p923_p10  ;;  %p929_p2 = scmp.lt.u32.totalorder %s927_s23, %s922_s13 }
  0x2f   : > { %p931_p6 = scmp.lt.u32.totalorder %s922_s13, %s1116_s20 }
  0x30   : > { %p926_p13 = pneg %p925_p12  ;;  %p930_p3 = por %p929_p2, %p928_p0 }
  0x32   : > { %p932_p8 = por %p931_p6, %p930_p3 }
  0x34   : > { %p933_p9 = pnand %p932_p8, %p926_p13 }
  0x36   : > { %936 = shalt.err (!%p933_p9)
}
  0x37   : > { %s937_s15 = scalar_lea.vmem %s1118_s10, 128  ;;  %s995_s16 = smov [#allocation2]  }
  0x38   : > { %p938_p1 = scmp.ne.s32.totalorder %s1118_s10, %s937_s15  ;;  %s942_s17 = sshll.u32 %s995_s16, 4  ;;  %s943_s17 = int_to_ptr.vmem [resolvable:$false] %s942_s17 }
  0x39   : > { %s944_s18 = scalar_lea.vmem %s943_s17, 256  ;;  %p945_p10 = scmp.lt.s32.totalorder %s1118_s10, %s943_s17 }
  0x3a   : > { %p940_p4 = pnand %p938_p1, %p924_p11  ;;  %p946_p12 = scmp.lt.s32.totalorder %s944_s18, %s937_s15 }
  0x3c   : > { %p941_p5 = pneg %p940_p4  ;;  %p947_p0 = por %p946_p12, %p945_p10 }
  0x3e   : > { %p948_p2 = pnand %p947_p0, %p941_p5 }
  0x40   : > { %951 = shalt.err (!%p948_p2)
}
  0x41   : > { %852 = dma.hbm_to_vmem [thread:$0]  (!%p1120_p7), %s1116_s20, 128, %s1118_s10, %s246_s27  }
  0x42   : > { %p1318_p13 = scmp.ne.s32.totalorder %s1315_s30, 0 }
  0x43   : > { %s267_s19 = sand.u32 (!%p1318_p13), 1, %s982_s25   ;;  %p1319_p11 = scmp.ne.s32.totalorder (!%p1318_p13), %s1314_s29, 0 }
  0x44   : > { %265 = sbr.rel (%p1318_p13) target bundleno = 732 (0x2dc), region = 48  ;;  %s665_s9 = sshll.u32 (!%p1318_p13), %s267_s19, 3 }
  0x45   : > { %s268_s13 = scalar_lea.sflag (!%p1318_p13), [#allocation3], %s267_s19  ;;  %s271_s21 = scalar_lea.vmem (!%p1318_p13), [#allocation2], %s665_s9 }
  0x4b   : > { %969 = dma.done.wait (%p1319_p11), %s268_s13, 128  }
  0x4c   : > { %971 = vsyncadd (%p1319_p11), %s268_s13, 4294967168  ;;  %p1320_p3 = scmp.eq.s32.totalorder %s1058_s28, 0 }
  0x4e   : > { %973 = dma.done.wait (%p1320_p3), [#allocation5], 256   ;;  %p1321_p6 = pmov %p1320_p3 }
  0x4f   : > { %v996_v0 = vmov 0.0|0.0   ;;  %vm997_vm0 = vmmov 0   ;;  %v998_v1 = vmov 0.0   ;;  %v310_v2 = vld [vmem:[#allocation4] sm:$0xff]  ;;  %v311_v3 = vld [vmem:[#allocation4 + $0x8] sm:$0xff]  ;;  %v394_v5 = vld [vmem:[%s1306_s3] sm:$0xff] }
  0x50   : > { %975 = vsyncadd (%p1321_p6), [#allocation5], 4294967040  ;;  %788 = vmatprep.subr.bf16.mxu0 %v996_v0  ;;  %715 = vmatprep.mubr.msk.f32.mxu0 %vm997_vm0, %v998_v1  ;;  %v789_v4 = vpack.c.bf16 %v311_v3, %v310_v2  ;;  %v395_v6 = vld [vmem:[%s1306_s3 + $0x8] sm:$0xff]  ;;  %v396_v7 = vld [vmem:[%s1306_s3 + $0x10] sm:$0xff]  ;;  %vm319_vm1 = vcmask 130048   ;;  %p305_p7 = scmp.lt.s32.totalorder %s1058_s28, 1 }
  0x51   : > { %791 = vmatprep.subr.bf16.mxu1 %v996_v0  ;;  %750 = vmatprep.mubr.msk.f32.mxu1 %vm997_vm0, %v998_v1  ;;  %v792_v8 = vpack.c.bf16 %v395_v6, %v394_v5  ;;  %v397_v9 = vld [vmem:[%s1306_s3 + $0x18] sm:$0xff]  ;;  %v309_v10 = vld [vmem:[%s271_s21] sm:$0xff]  ;;  %v400_v15 = vld [vmem:[%s1306_s3 + $0x30] sm:$0xff]  ;;  %vm581_vm2 = vcmask 31744  }
  0x52   : > { %790 = vmatpush3.bf16.msra.mxu0 %v789_v4  ;;  %v795_v11 = vpack.c.bf16 %v397_v9, %v396_v7  ;;  %v398_v12 = vld [vmem:[%s1306_s3 + $0x20] sm:$0xff]  ;;  %v399_v13 = vld [vmem:[%s1306_s3 + $0x28] sm:$0xff]  ;;  %v401_v16 = vld [vmem:[%s1306_s3 + $0x38] sm:$0xff]  ;;  %s1327_s28 = smov (!%p305_p7, %s1058_s28), 1 }
  0x53   : > { %793 = vmatpush3.bf16.msra.mxu1 %v792_v8  ;;  %815 = vmatprep.subr.bf16.mxu0 %v996_v0  ;;  %v798_v14 = vpack.c.bf16 %v399_v13, %v398_v12  ;;  %v801_v17 = vpack.c.bf16 %v401_v16, %v400_v15  ;;  %v402_v18 = vld [vmem:[%s1306_s3 + $0x40] sm:$0xff]  ;;  %v403_v19 = vld [vmem:[%s1306_s3 + $0x48] sm:$0xff]  ;;  %v404_v21 = vld [vmem:[%s1306_s3 + $0x50] sm:$0xff]  ;;  %s667_s19 = sshll.u32 %s1327_s28, 3 }
  0x54   : > { %794 = vmatprep.subr.bf16.mxu1 %v996_v0  ;;  %v804_v20 = vpack.c.bf16 %v403_v19, %v402_v18  ;;  %v405_v22 = vld [vmem:[%s1306_s3 + $0x58] sm:$0xff]  ;;  %v406_v24 = vld [vmem:[%s1306_s3 + $0x60] sm:$0xff]  ;;  %v407_v25 = vld [vmem:[%s1306_s3 + $0x68] sm:$0xff]  ;;  %s308_s30 = scalar_lea.vmem %s1310_s7, %s667_s19 }
  0x55   : > { %716 = vmatmul.mubr.msk.f32.vlgmr.msra.gmra.mrb[0].mxu0 %vm319_vm1, %v309_v10  ;;  %v807_v23 = vpack.c.bf16 %v405_v22, %v404_v21  ;;  %v810_v26 = vpack.c.bf16 %v407_v25, %v406_v24  ;;  %v408_v27 = vld [vmem:[%s1306_s3 + $0x70] sm:$0xff]  ;;  %v409_v28 = vld [vmem:[%s1306_s3 + $0x78] sm:$0xff]  ;;  %v488_v30 = vld [vmem:[%s1308_s5] sm:$0xff] }
  0x56   : > { %785 = vmatprep.mubr.msk.f32.mxu0 %vm997_vm0, %v998_v1  ;;  %v813_v29 = vpack.c.bf16 %v409_v28, %v408_v27  ;;  %v489_v31 = vld [vmem:[%s1308_s5 + $0x8] sm:$0xff]  ;;  %v490_v32 = vld [vmem:[%s1308_s5 + $0x10] sm:$0xff]  ;;  %v491_v34 = vld [vmem:[%s1308_s5 + $0x18] sm:$0xff] }
  0x57   : > { %796 = vmatpush3.bf16.msra.mxu1 %v795_v11  ;;  %v816_v33 = vpack.c.bf16 %v489_v31, %v488_v30  ;;  %v819_v35 = vpack.c.bf16 %v491_v34, %v490_v32  ;;  %v492_v36 = vld [vmem:[%s1308_s5 + $0x20] sm:$0xff]  ;;  %v493_v37 = vld [vmem:[%s1308_s5 + $0x28] sm:$0xff]  ;;  %v494_v39 = vld [vmem:[%s1308_s5 + $0x30] sm:$0xff] }
  0x58   : > { %797 = vmatprep.subr.bf16.mxu1 %v996_v0  ;;  %v822_v38 = vpack.c.bf16 %v493_v37, %v492_v36  ;;  %v495_v40 = vld [vmem:[%s1308_s5 + $0x38] sm:$0xff]  ;;  %v496_v42 = vld [vmem:[%s1308_s5 + $0x40] sm:$0xff]  ;;  %v497_v43 = vld [vmem:[%s1308_s5 + $0x48] sm:$0xff] }
  0x59   : > { %817 = vmatpush3.bf16.msra.mxu0 %v816_v33  ;;  %v825_v41 = vpack.c.bf16 %v495_v40, %v494_v39  ;;  %v828_v44 = vpack.c.bf16 %v497_v43, %v496_v42  ;;  %v498_v45 = vld [vmem:[%s1308_s5 + $0x50] sm:$0xff]  ;;  %v499_v46 = vld [vmem:[%s1308_s5 + $0x58] sm:$0xff]  ;;  %v500_v48 = vld [vmem:[%s1308_s5 + $0x60] sm:$0xff] }
  0x5a   : > { %818 = vmatprep.subr.bf16.mxu0 %v996_v0  ;;  %v831_v47 = vpack.c.bf16 %v499_v46, %v498_v45  ;;  %v501_v49 = vld [vmem:[%s1308_s5 + $0x68] sm:$0xff]  ;;  %v668_v51 = vld [vmem:[%s1305_s2] ss:$0 sm:$0xff]  ;;  %v502_v56 = vld [vmem:[%s1308_s5 + $0x70] sm:$0xff] }
  0x5b   : > { %799 = vmatpush3.bf16.msra.mxu1 %v798_v14  ;;  %v834_v50 = vpack.c.bf16 %v501_v49, %v500_v48  ;;  %v503_v57 = vld [vmem:[%s1308_s5 + $0x78] sm:$0xff]  ;;  %v670_v59 = vld [vmem:[%s1307_s4] ss:$0 sm:$0xff] }
  0x5c   : > { %800 = vmatprep.subr.bf16.mxu1 %v996_v0  ;;  %v837_v58 = vpack.c.bf16 %v503_v57, %v502_v56 }
  0x5d   : > { %820 = vmatpush3.bf16.msra.mxu0 %v819_v35 }
  0x5e   : > { %821 = vmatprep.subr.bf16.mxu0 %v996_v0 }
  0x5f   : > { %802 = vmatpush3.bf16.msra.mxu1 %v801_v17 }
  0x60   : > { %803 = vmatprep.subr.bf16.mxu1 %v996_v0 }
  0x61   : > { %823 = vmatpush3.bf16.msra.mxu0 %v822_v38 }
  0x62   : > { %824 = vmatprep.subr.bf16.mxu0 %v996_v0 }
  0x63   : > { %805 = vmatpush3.bf16.msra.mxu1 %v804_v20 }
  0x64   : > { %806 = vmatprep.subr.bf16.mxu1 %v996_v0 }
  0x65   : > { %826 = vmatpush3.bf16.msra.mxu0 %v825_v41 }
  0x66   : > { %827 = vmatprep.subr.bf16.mxu0 %v996_v0 }
  0x67   : > { %808 = vmatpush3.bf16.msra.mxu1 %v807_v23 }
  0x68   : > { %809 = vmatprep.subr.bf16.mxu1 %v996_v0 }
  0x69   : > { %829 = vmatpush3.bf16.msra.mxu0 %v828_v44 }
  0x6a   : > { %830 = vmatprep.subr.bf16.mxu0 %v996_v0 }
  0x6b   : > { %811 = vmatpush3.bf16.msra.mxu1 %v810_v26 }
  0x6c   : > { %812 = vmatprep.subr.bf16.mxu1 %v996_v0 }
  0x6d   : > { %832 = vmatpush3.bf16.msra.mxu0 %v831_v47 }
  0x6e   : > { %833 = vmatprep.subr.bf16.mxu0 %v996_v0 }
  0x6f   : > { %814 = vmatpush3.bf16.msra.mxu1 %v813_v29 }
  0x71   : > { %835 = vmatpush3.bf16.msra.mxu0 %v834_v50 }
  0x72   : > { %836 = vmatprep.subr.bf16.mxu0 %v996_v0  ;;  %v671_v0 = vld [vmem:[%s1309_s6] ss:$0 sm:$0xff] }
  0x75   : > { %838 = vmatpush3.bf16.msra.mxu0 %v837_v58 }
 0x128   : > { %v389_v52 = vpop.f32.mrb[0].mxu0 }
 0x129   : > { %v390_v53 = vadd.f32 %v668_v51, %v389_v52  ;;  %v717_v54 = vpop.f32.mrb[1].mxu0 }
 0x12b   : > { %v393_v55 = vmax.f32 %v390_v53, 0.0 }
 0x12d   : > { %751 = vmatmul.mubr.f32.vlgmr.msra.gmra.mrb[0].mxu1 %v393_v55 }
 0x200   : > { %v483_v60 = vpop.f32.mrb[0].mxu1 }
 0x201   : > { %v484_v61 = vadd.f32 %v670_v59, %v483_v60  ;;  %v752_v62 = vpop.f32.mrb[1].mxu1 }
 0x203   : > { %v487_v63 = vmax.f32 %v484_v61, 0.0 }
 0x205   : > { %786 = vmatmul.mubr.f32.vlgmr.msra.gmra.mrb[2].mxu0 %v487_v63 }
 0x2d8   : > { %v577_v1 = vpop.f32.mrb[2].mxu0 }
 0x2d9   : > { %v578_v2 = vadd.f32 %v671_v0, %v577_v1  ;;  %v787_v3 = vpop.f32.mrb[3].mxu0 }
 0x2db   : > { %582 = vst.msk [vmem:[%s308_s30] sm:$0xff] %vm581_vm2, %v578_v2 }
 0x2dc PF: > { %p18_p8 = scmp.ge.s32.totalorder %s1083_s11, 4   ;;  %s1322_s24 = smov %s982_s25 }
 0x2dd   : > { %s1323_s25 = smov %s986_s26  ;;  %s1324_s26 = smov %s1109_s14 }
 0x2de   : > { %s1325_s27 = smov %s1083_s11  ;;  %20 = sbr.rel (!%p18_p8) target bundleno = 4 (0x4), region = 92 }
 0x2e5   :  { %602 = vsyncpa [#allocation3], 1 }
 0x2e6   :  { %604 = vsyncpa [#allocation3 + $0x1], 1 }
 0x2e7   :  { %605 = vsyncpa [#allocation5], 1 }

// kernel: tpu_custom_call.1
= control target key start
LH: loop header
LB: loop body
LE: loop exit
PB: predicated region body
PF: predicated region fallthrough
CT: control target
= control target key end

     0   :  { %12 = vsyncpa [#allocation3], 0  ;;  %s1303_s0 = inlined_call_operand.hbm [shape: f32[16,16], index: 0, kind: input, shape index: {}]   ;;  %s1304_s1 = inlined_call_operand.hbm [shape: f32[16,128], index: 1, kind: input, shape index: {}]   ;;  %s1305_s2 = inlined_call_operand.vmem [shape: f32[1,128], index: 2, kind: input, shape index: {}]   ;;  %s1306_s3 = inlined_call_operand.vmem [shape: f32[128,128], index: 3, kind: input, shape index: {}]   ;;  %s1307_s4 = inlined_call_operand.vmem [shape: f32[1,128], index: 4, kind: input, shape index: {}]   ;;  %s1308_s5 = inlined_call_operand.vmem [shape: f32[128,4], index: 5, kind: input, shape index: {}]   ;;  %s1309_s6 = inlined_call_operand.vmem [shape: f32[1,4], index: 6, kind: input, shape index: {}]   ;;  %s1310_s7 = inlined_call_operand.vmem [shape: f32[16,4], index: 7, kind: output, shape index: {}]  }
   0x1   :  { %14 = vsyncpa [#allocation3 + $0x1], 0 }
   0x2   :  { %15 = vsyncpa [#allocation5], 0  ;;  %s1039_s24 = smov 0   ;;  %s1041_s25 = smov 0  }
   0x3   :  { %s1043_s26 = smov 0   ;;  %s1045_s27 = smov 0  }
   0x4 LB: > { %s1058_s28 = sadd.s32 4294967295, %s990_s27   ;;  %p41_p0 = scmp.ne.s32.totalorder %s982_s25, %s978_s24  ;;  %s990_s27 = sphi %s1045_s27, %s1325_s27   ;;  %s986_s26 = sphi %s1043_s26, %s1324_s26   ;;  %s982_s25 = sphi %s1041_s25, %s1323_s25   ;;  %s978_s24 = sphi %s1039_s24, %s1322_s24  }
   0x5   : > { %p1311_p1 = scmp.eq.s32.totalorder %s1058_s28, 0  ;;  %p659_p2 = scmp.ge.s32.totalorder %s990_s27, 1 }
   0x6   : > { %p204_p3 = scmp.lt.s32.totalorder %s990_s27, 3  ;;  %s992_s8 = smov [#allocation4]  }
   0x7   : > { %p1066_p4 = por %p1311_p1, %p41_p0  ;;  %s216_s9 = sshll.u32 %s992_s8, 4  ;;  %s217_s9 = int_to_ptr.vmem [resolvable:$true] %s216_s9 }
   0x8   : > { %p1070_p5 = pnand %p659_p2, %p204_p3  ;;  %s1083_s11 = sadd.s32 1, %s990_s27  }
   0x9   : > { %s1314_s29 = scalar_select %p1066_p4, 1, 0 }
   0xa   : > { %s1315_s30 = scalar_select %p1070_p5, 1, 0 }
   0xb   : > { %p845_p6 = pneg %p1070_p5  ;;  %s28_s12 = sadd.s32 1, %s986_s26 }
   0xc   : > { %s25_s13 = ssub.s32 %s990_s27, %s1083_s11  ;;  %s894_s16 = scalar_lea.hbm %s1304_s1, 256 }
   0xd   : > { %p1078_p7 = pnand %p845_p6, %p1311_p1  ;;  %p895_p8 = scmp.ne.s32.totalorder %s1304_s1, %s894_s16 }
   0xe   : > { %p901_p12 = scmp.lt.u32.totalorder %s894_s16, %s1304_s1 }
   0xf   : > { %p896_p9 = pneg %p1078_p7 }
  0x11   : > { %p897_p10 = pnand %p896_p9, %p895_p8 }
  0x13   : > { %p898_p11 = pneg %p897_p10 }
  0x15   : > { %p903_p13 = pnand %p901_p12, %p898_p11 }
  0x17   : > { %906 = shalt.err (!%p903_p13)
}
  0x18   : > { %s907_s21 = scalar_lea.vmem %s217_s9, 256  ;;  %p915_p6 = scmp.lt.s32.totalorder %s217_s9, %s217_s9 }
  0x19   : > { %p908_p0 = scmp.ne.s32.totalorder %s217_s9, %s907_s21  ;;  %p916_p1 = scmp.lt.s32.totalorder %s907_s21, %s907_s21 }
  0x1b   : > { %p910_p2 = pnand %p908_p0, %p896_p9  ;;  %p917_p4 = por %p916_p1, %p915_p6 }
  0x1d   : > { %p911_p3 = pneg %p910_p2 }
  0x1f   : > { %p918_p5 = pnand %p917_p4, %p911_p3 }
  0x21   : > { %921 = shalt.err (!%p918_p5)
}
  0x22   : > { %s993_s22 = smov 128   ;;  %s994_s23 = smov 8  }
  0x23   : > { %848 = dma.hbm_to_vmem [thread:$0]  (!%p1078_p7), %s1304_s1, 256, %s217_s9, [#allocation5], %s993_s22, %s993_s22, %s994_s23  }
  0x24   : > { %p26_p8 = scmp.eq.s32.totalorder %s25_s13, 0  ;;  %p35_p9 = scmp.ne.s32.totalorder %s986_s26, %s982_s25 }
  0x25   : > { %p36_p1 = scmp.eq.s32.totalorder %s990_s27, 0  ;;  %p854_p4 = scmp.lt.s32.totalorder %s990_s27, 2 }
  0x26   : > { %s1109_s14 = scalar_select %p26_p8, %s986_s26, %s28_s12  }
  0x27   : > { %p37_p5 = por %p36_p1, %p35_p9  ;;  %s245_s15 = sand.u32 1, %s986_s26  }
  0x28   : > { %s662_s16 = sshll.u32 %s245_s15, 3  ;;  %s663_s17 = sshll.u32 %s990_s27, 7 }
  0x29   : > { %s1116_s20 = scalar_lea.hbm %s1303_s0, %s663_s17  ;;  %s249_s9 = scalar_lea.vmem [#allocation2], %s662_s16 }
  0x2a   : > { %s256_s10 = sshll.u32 %s249_s9, 4  ;;  %p1120_p7 = pnand %p854_p4, %p37_p5  ;;  %s1118_s10 = int_to_ptr.vmem [resolvable:$true] %s256_s10 }
  0x2b   : > { %s246_s27 = scalar_lea.sflag [#allocation3], %s245_s15  ;;  %s922_s13 = scalar_lea.hbm %s1116_s20, 128 }
  0x2c   : > { %p923_p10 = scmp.ne.s32.totalorder %s1116_s20, %s922_s13  ;;  %p924_p11 = pneg %p1120_p7 }
  0x2d   : > { %s927_s23 = scalar_lea.hbm %s1303_s0, 256  ;;  %p928_p0 = scmp.lt.u32.totalorder %s1116_s20, %s1303_s0 }
  0x2e   : > { %p925_p12 = pnand %p924_p11, %p923_p10  ;;  %p929_p2 = scmp.lt.u32.totalorder %s927_s23, %s922_s13 }
  0x2f   : > { %p931_p6 = scmp.lt.u32.totalorder %s922_s13, %s1116_s20 }
  0x30   : > { %p926_p13 = pneg %p925_p12  ;;  %p930_p3 = por %p929_p2, %p928_p0 }
  0x32   : > { %p932_p8 = por %p931_p6, %p930_p3 }
  0x34   : > { %p933_p9 = pnand %p932_p8, %p926_p13 }
  0x36   : > { %936 = shalt.err (!%p933_p9)
}
  0x37   : > { %s937_s15 = scalar_lea.vmem %s1118_s10, 128  ;;  %s995_s16 = smov [#allocation2]  }
  0x38   : > { %p938_p1 = scmp.ne.s32.totalorder %s1118_s10, %s937_s15  ;;  %s942_s17 = sshll.u32 %s995_s16, 4  ;;  %s943_s17 = int_to_ptr.vmem [resolvable:$false] %s942_s17 }
  0x39   : > { %s944_s18 = scalar_lea.vmem %s943_s17, 256  ;;  %p945_p10 = scmp.lt.s32.totalorder %s1118_s10, %s943_s17 }
  0x3a   : > { %p940_p4 = pnand %p938_p1, %p924_p11  ;;  %p946_p12 = scmp.lt.s32.totalorder %s944_s18, %s937_s15 }
  0x3c   : > { %p941_p5 = pneg %p940_p4  ;;  %p947_p0 = por %p946_p12, %p945_p10 }
  0x3e   : > { %p948_p2 = pnand %p947_p0, %p941_p5 }
  0x40   : > { %951 = shalt.err (!%p948_p2)
}
  0x41   : > { %852 = dma.hbm_to_vmem [thread:$0]  (!%p1120_p7), %s1116_s20, 128, %s1118_s10, %s246_s27  }
  0x42   : > { %p1318_p13 = scmp.ne.s32.totalorder %s1315_s30, 0 }
  0x43   : > { %s267_s19 = sand.u32 (!%p1318_p13), 1, %s982_s25   ;;  %p1319_p11 = scmp.ne.s32.totalorder (!%p1318_p13), %s1314_s29, 0 }
  0x44   : > { %265 = sbr.rel (%p1318_p13) target bundleno = 732 (0x2dc), region = 48  ;;  %s665_s9 = sshll.u32 (!%p1318_p13), %s267_s19, 3 }
  0x45   : > { %s268_s13 = scalar_lea.sflag (!%p1318_p13), [#allocation3], %s267_s19  ;;  %s271_s21 = scalar_lea.vmem (!%p1318_p13), [#allocation2], %s665_s9 }
  0x4b   : > { %969 = dma.done.wait (%p1319_p11), %s268_s13, 128  }
  0x4c   : > { %971 = vsyncadd (%p1319_p11), %s268_s13, 4294967168  ;;  %p1320_p3 = scmp.eq.s32.totalorder %s1058_s28, 0 }
  0x4e   : > { %973 = dma.done.wait (%p1320_p3), [#allocation5], 256   ;;  %p1321_p6 = pmov %p1320_p3 }
  0x4f   : > { %v996_v0 = vmov 0.0|0.0   ;;  %vm997_vm0 = vmmov 0   ;;  %v998_v1 = vmov 0.0   ;;  %v310_v2 = vld [vmem:[#allocation4] sm:$0xff]  ;;  %v311_v3 = vld [vmem:[#allocation4 + $0x8] sm:$0xff]  ;;  %v394_v5 = vld [vmem:[%s1306_s3] sm:$0xff] }
  0x50   : > { %975 = vsyncadd (%p1321_p6), [#allocation5], 4294967040  ;;  %788 = vmatprep.subr.bf16.mxu0 %v996_v0  ;;  %715 = vmatprep.mubr.msk.f32.mxu0 %vm997_vm0, %v998_v1  ;;  %v789_v4 = vpack.c.bf16 %v311_v3, %v310_v2  ;;  %v395_v6 = vld [vmem:[%s1306_s3 + $0x8] sm:$0xff]  ;;  %v396_v7 = vld [vmem:[%s1306_s3 + $0x10] sm:$0xff]  ;;  %vm319_vm1 = vcmask 130048   ;;  %p305_p7 = scmp.lt.s32.totalorder %s1058_s28, 1 }
  0x51   : > { %791 = vmatprep.subr.bf16.mxu1 %v996_v0  ;;  %750 = vmatprep.mubr.msk.f32.mxu1 %vm997_vm0, %v998_v1  ;;  %v792_v8 = vpack.c.bf16 %v395_v6, %v394_v5  ;;  %v397_v9 = vld [vmem:[%s1306_s3 + $0x18] sm:$0xff]  ;;  %v309_v10 = vld [vmem:[%s271_s21] sm:$0xff]  ;;  %v400_v15 = vld [vmem:[%s1306_s3 + $0x30] sm:$0xff]  ;;  %vm581_vm2 = vcmask 31744  }
  0x52   : > { %790 = vmatpush3.bf16.msra.mxu0 %v789_v4  ;;  %v795_v11 = vpack.c.bf16 %v397_v9, %v396_v7  ;;  %v398_v12 = vld [vmem:[%s1306_s3 + $0x20] sm:$0xff]  ;;  %v399_v13 = vld [vmem:[%s1306_s3 + $0x28] sm:$0xff]  ;;  %v401_v16 = vld [vmem:[%s1306_s3 + $0x38] sm:$0xff]  ;;  %s1327_s28 = smov (!%p305_p7, %s1058_s28), 1 }
  0x53   : > { %793 = vmatpush3.bf16.msra.mxu1 %v792_v8  ;;  %815 = vmatprep.subr.bf16.mxu0 %v996_v0  ;;  %v798_v14 = vpack.c.bf16 %v399_v13, %v398_v12  ;;  %v801_v17 = vpack.c.bf16 %v401_v16, %v400_v15  ;;  %v402_v18 = vld [vmem:[%s1306_s3 + $0x40] sm:$0xff]  ;;  %v403_v19 = vld [vmem:[%s1306_s3 + $0x48] sm:$0xff]  ;;  %v404_v21 = vld [vmem:[%s1306_s3 + $0x50] sm:$0xff]  ;;  %s667_s19 = sshll.u32 %s1327_s28, 3 }
  0x54   : > { %794 = vmatprep.subr.bf16.mxu1 %v996_v0  ;;  %v804_v20 = vpack.c.bf16 %v403_v19, %v402_v18  ;;  %v405_v22 = vld [vmem:[%s1306_s3 + $0x58] sm:$0xff]  ;;  %v406_v24 = vld [vmem:[%s1306_s3 + $0x60] sm:$0xff]  ;;  %v407_v25 = vld [vmem:[%s1306_s3 + $0x68] sm:$0xff]  ;;  %s308_s30 = scalar_lea.vmem %s1310_s7, %s667_s19 }
  0x55   : > { %716 = vmatmul.mubr.msk.f32.vlgmr.msra.gmra.mrb[0].mxu0 %vm319_vm1, %v309_v10  ;;  %v807_v23 = vpack.c.bf16 %v405_v22, %v404_v21  ;;  %v810_v26 = vpack.c.bf16 %v407_v25, %v406_v24  ;;  %v408_v27 = vld [vmem:[%s1306_s3 + $0x70] sm:$0xff]  ;;  %v409_v28 = vld [vmem:[%s1306_s3 + $0x78] sm:$0xff]  ;;  %v488_v30 = vld [vmem:[%s1308_s5] sm:$0xff] }
  0x56   : > { %785 = vmatprep.mubr.msk.f32.mxu0 %vm997_vm0, %v998_v1  ;;  %v813_v29 = vpack.c.bf16 %v409_v28, %v408_v27  ;;  %v489_v31 = vld [vmem:[%s1308_s5 + $0x8] sm:$0xff]  ;;  %v490_v32 = vld [vmem:[%s1308_s5 + $0x10] sm:$0xff]  ;;  %v491_v34 = vld [vmem:[%s1308_s5 + $0x18] sm:$0xff] }
  0x57   : > { %796 = vmatpush3.bf16.msra.mxu1 %v795_v11  ;;  %v816_v33 = vpack.c.bf16 %v489_v31, %v488_v30  ;;  %v819_v35 = vpack.c.bf16 %v491_v34, %v490_v32  ;;  %v492_v36 = vld [vmem:[%s1308_s5 + $0x20] sm:$0xff]  ;;  %v493_v37 = vld [vmem:[%s1308_s5 + $0x28] sm:$0xff]  ;;  %v494_v39 = vld [vmem:[%s1308_s5 + $0x30] sm:$0xff] }
  0x58   : > { %797 = vmatprep.subr.bf16.mxu1 %v996_v0  ;;  %v822_v38 = vpack.c.bf16 %v493_v37, %v492_v36  ;;  %v495_v40 = vld [vmem:[%s1308_s5 + $0x38] sm:$0xff]  ;;  %v496_v42 = vld [vmem:[%s1308_s5 + $0x40] sm:$0xff]  ;;  %v497_v43 = vld [vmem:[%s1308_s5 + $0x48] sm:$0xff] }
  0x59   : > { %817 = vmatpush3.bf16.msra.mxu0 %v816_v33  ;;  %v825_v41 = vpack.c.bf16 %v495_v40, %v494_v39  ;;  %v828_v44 = vpack.c.bf16 %v497_v43, %v496_v42  ;;  %v498_v45 = vld [vmem:[%s1308_s5 + $0x50] sm:$0xff]  ;;  %v499_v46 = vld [vmem:[%s1308_s5 + $0x58] sm:$0xff]  ;;  %v500_v48 = vld [vmem:[%s1308_s5 + $0x60] sm:$0xff] }
  0x5a   : > { %818 = vmatprep.subr.bf16.mxu0 %v996_v0  ;;  %v831_v47 = vpack.c.bf16 %v499_v46, %v498_v45  ;;  %v501_v49 = vld [vmem:[%s1308_s5 + $0x68] sm:$0xff]  ;;  %v668_v51 = vld [vmem:[%s1305_s2] ss:$0 sm:$0xff]  ;;  %v502_v56 = vld [vmem:[%s1308_s5 + $0x70] sm:$0xff] }
  0x5b   : > { %799 = vmatpush3.bf16.msra.mxu1 %v798_v14  ;;  %v834_v50 = vpack.c.bf16 %v501_v49, %v500_v48  ;;  %v503_v57 = vld [vmem:[%s1308_s5 + $0x78] sm:$0xff]  ;;  %v670_v59 = vld [vmem:[%s1307_s4] ss:$0 sm:$0xff] }
  0x5c   : > { %800 = vmatprep.subr.bf16.mxu1 %v996_v0  ;;  %v837_v58 = vpack.c.bf16 %v503_v57, %v502_v56 }
  0x5d   : > { %820 = vmatpush3.bf16.msra.mxu0 %v819_v35 }
  0x5e   : > { %821 = vmatprep.subr.bf16.mxu0 %v996_v0 }
  0x5f   : > { %802 = vmatpush3.bf16.msra.mxu1 %v801_v17 }
  0x60   : > { %803 = vmatprep.subr.bf16.mxu1 %v996_v0 }
  0x61   : > { %823 = vmatpush3.bf16.msra.mxu0 %v822_v38 }
  0x62   : > { %824 = vmatprep.subr.bf16.mxu0 %v996_v0 }
  0x63   : > { %805 = vmatpush3.bf16.msra.mxu1 %v804_v20 }
  0x64   : > { %806 = vmatprep.subr.bf16.mxu1 %v996_v0 }
  0x65   : > { %826 = vmatpush3.bf16.msra.mxu0 %v825_v41 }
  0x66   : > { %827 = vmatprep.subr.bf16.mxu0 %v996_v0 }
  0x67   : > { %808 = vmatpush3.bf16.msra.mxu1 %v807_v23 }
  0x68   : > { %809 = vmatprep.subr.bf16.mxu1 %v996_v0 }
  0x69   : > { %829 = vmatpush3.bf16.msra.mxu0 %v828_v44 }
  0x6a   : > { %830 = vmatprep.subr.bf16.mxu0 %v996_v0 }
  0x6b   : > { %811 = vmatpush3.bf16.msra.mxu1 %v810_v26 }
  0x6c   : > { %812 = vmatprep.subr.bf16.mxu1 %v996_v0 }
  0x6d   : > { %832 = vmatpush3.bf16.msra.mxu0 %v831_v47 }
  0x6e   : > { %833 = vmatprep.subr.bf16.mxu0 %v996_v0 }
  0x6f   : > { %814 = vmatpush3.bf16.msra.mxu1 %v813_v29 }
  0x71   : > { %835 = vmatpush3.bf16.msra.mxu0 %v834_v50 }
  0x72   : > { %836 = vmatprep.subr.bf16.mxu0 %v996_v0  ;;  %v671_v0 = vld [vmem:[%s1309_s6] ss:$0 sm:$0xff] }
  0x75   : > { %838 = vmatpush3.bf16.msra.mxu0 %v837_v58 }
 0x128   : > { %v389_v52 = vpop.f32.mrb[0].mxu0 }
 0x129   : > { %v390_v53 = vadd.f32 %v668_v51, %v389_v52  ;;  %v717_v54 = vpop.f32.mrb[1].mxu0 }
 0x12b   : > { %v393_v55 = vmax.f32 %v390_v53, 0.0 }
 0x12d   : > { %751 = vmatmul.mubr.f32.vlgmr.msra.gmra.mrb[0].mxu1 %v393_v55 }
 0x200   : > { %v483_v60 = vpop.f32.mrb[0].mxu1 }
 0x201   : > { %v484_v61 = vadd.f32 %v670_v59, %v483_v60  ;;  %v752_v62 = vpop.f32.mrb[1].mxu1 }
 0x203   : > { %v487_v63 = vmax.f32 %v484_v61, 0.0 }
 0x205   : > { %786 = vmatmul.mubr.f32.vlgmr.msra.gmra.mrb[2].mxu0 %v487_v63 }
 0x2d8   : > { %v577_v1 = vpop.f32.mrb[2].mxu0 }
 0x2d9   : > { %v578_v2 = vadd.f32 %v671_v0, %v577_v1  ;;  %v787_v3 = vpop.f32.mrb[3].mxu0 }
 0x2db   : > { %582 = vst.msk [vmem:[%s308_s30] sm:$0xff] %vm581_vm2, %v578_v2 }
 0x2dc PF: > { %p18_p8 = scmp.ge.s32.totalorder %s1083_s11, 4   ;;  %s1322_s24 = smov %s982_s25 }
 0x2dd   : > { %s1323_s25 = smov %s986_s26  ;;  %s1324_s26 = smov %s1109_s14 }
 0x2de   : > { %s1325_s27 = smov %s1083_s11  ;;  %20 = sbr.rel (!%p18_p8) target bundleno = 4 (0x4), region = 92 }
 0x2e5   :  { %602 = vsyncpa [#allocation3], 1 }
 0x2e6   :  { %604 = vsyncpa [#allocation3 + $0x1], 1 }
 0x2e7   :  { %605 = vsyncpa [#allocation5], 1 }

</bundles_post_ra>
